<compile_context>
chip_gen: v7x
topology: tpu7x:2x2x1
jax: 0.10.0
libtpu: 0.0.40
codegen_flags: <defaults>
</compile_context>

<pallas_src>
import functools

import jax
import jax.numpy as jnp
from jax.experimental import pallas as pl
from jax.experimental.pallas import tpu as pltpu

_LANE = 128
_SUBLANE = 8


def _round_up(a, m):
    return (a + m - 1) // m * m


def _pose_linear_kernel(x_ref, w_ref, b_ref, o_ref):
    # x_ref: [TN, Ppad] bf16 tile, w_ref: [Ppad, Ppad] bf16 (VMEM-resident),
    # b_ref: [1, Ppad] f32 (VMEM-resident), o_ref: [TN, Ppad] f32.
    y = jnp.dot(x_ref[...], w_ref[...], preferred_element_type=jnp.float32)
    o_ref[...] = (y + b_ref[...]).astype(o_ref.dtype)


@functools.partial(jax.jit, static_argnames=("tn",))
def pose_linear(x, w, b, *, tn=512):
    """x: [B, S, P] float32, w: [P, P], b: [P] -> [B, S, P] float32."""
    B, S, P = x.shape
    N = B * S

    # Lane-dense channel axis: pad P up to a multiple of 128.
    Ppad = _round_up(max(P, _LANE), _LANE)
    # Row tile: <= tn, multiple of 8; N padded to a multiple of the tile.
    tn_eff = min(tn, _round_up(N, _SUBLANE))
    Npad = _round_up(N, tn_eff)

    x2 = x.reshape(N, P).astype(jnp.bfloat16)
    x_p = jnp.pad(x2, ((0, Npad - N), (0, Ppad - P)))
    w_p = jnp.pad(w.astype(jnp.bfloat16), ((0, Ppad - P), (0, Ppad - P)))
    b_p = jnp.pad(b.reshape(1, P).astype(jnp.float32), ((0, 0), (0, Ppad - P)))

    grid = (Npad // tn_eff,)

    cost = pl.CostEstimate(
        flops=2 * Npad * Ppad * Ppad,
        transcendentals=0,
        bytes_accessed=(2 * Npad * Ppad          # x (bf16 in)
                        + 2 * Ppad * Ppad        # W (bf16, fetched once)
                        + 4 * Ppad               # b (f32, fetched once)
                        + 4 * Npad * Ppad),      # out (f32)
    )

    out = pl.pallas_call(
        _pose_linear_kernel,
        out_shape=jax.ShapeDtypeStruct((Npad, Ppad), jnp.float32),
        grid_spec=pltpu.PrefetchScalarGridSpec(
            num_scalar_prefetch=0,
            grid=grid,
            in_specs=[
                pl.BlockSpec((tn_eff, Ppad), lambda i: (i, 0)),   # x tile
                pl.BlockSpec((Ppad, Ppad), lambda i: (0, 0)),     # W resident
                pl.BlockSpec((1, Ppad), lambda i: (0, 0)),        # b resident
            ],
            out_specs=pl.BlockSpec((tn_eff, Ppad), lambda i: (i, 0)),
        ),
        compiler_params=pltpu.CompilerParams(
            # Row tiles are independent -> shard across v7x's 2 TensorCores.
            dimension_semantics=("parallel",),
            vmem_limit_bytes=64 << 20,
        ),
        cost_estimate=cost,
    )(x_p, w_p, b_p)

    return out[:N, :P].reshape(B, S, P)


class Config:
    def __init__(self, pose_size, lr):
        self.pose_size = pose_size
        self.lr = lr


class BaseModelPallas:
    """JAX/Pallas realization of BaseModel with a minimal concrete forward."""

    def __init__(self, config, key):
        self.config = config
        self.pose_size = config.pose_size
        self.create_model(key)

    def create_model(self, key):
        kw, kb = jax.random.split(key)
        P = self.pose_size
        self.w = jax.random.normal(kw, (P, P), dtype=jnp.float32) * (1.0 / jnp.sqrt(P))
        self.b = jax.random.normal(kb, (P,), dtype=jnp.float32) * 0.01

    def forward(self, poses):
        # poses: [batch, seq, pose_size]
        return pose_linear(poses, self.w, self.b)

    def model_name(self):
        return "{}-lr{}".format(self.__class__.__name__, self.config.lr)


if __name__ == "__main__":
    key = jax.random.PRNGKey(0)
    k_model, k_data = jax.random.split(key)

    cfg = Config(pose_size=32, lr=1e-3)
    model = BaseModelPallas(cfg, k_model)

    batch, seq = 2, 8
    poses = jax.random.normal(k_data, (batch, seq, cfg.pose_size), dtype=jnp.float32)

    out = model.forward(poses)
    out = jax.block_until_ready(out)

    # Sanity check against a plain-JAX f32 reference; the kernel uses bf16
    # operands with f32 accumulate, so tolerance reflects bf16 input rounding.
    ref = poses.reshape(-1, cfg.pose_size) @ model.w + model.b
    ref = ref.reshape(batch, seq, cfg.pose_size)
    assert out.shape == (batch, seq, cfg.pose_size)
    assert jnp.allclose(out, ref, atol=2e-2, rtol=2e-2), float(
        jnp.max(jnp.abs(out - ref)))

    print("KERNEL_OK")
</pallas_src>

<mosaic_0001>
module attributes {stable_mosaic.version = 11 : i64} {
  func.func @_pose_linear_kernel(%arg0: i32, %arg1: memref<16x128xbf16, #tpu.memory_space<vmem>>, %arg2: memref<128x128xbf16, #tpu.memory_space<vmem>>, %arg3: memref<1x128xf32, #tpu.memory_space<vmem>>, %arg4: memref<16x128xf32, #tpu.memory_space<vmem>>) attributes {dimension_semantics = [#tpu.dimension_semantics<parallel>], iteration_bounds = array<i64: 1>, scalar_prefetch = 0 : i64, scratch_operands = 0 : i64, tpu.core_type = #tpu.core_type<tc>, window_params = [{transform_indices = @transform_0, window_bounds = array<i64: 16, 128>}, {pipeline_mode = #tpu.pipeline_mode<synchronous>, transform_indices = @transform_1, window_bounds = array<i64: 128, 128>}, {pipeline_mode = #tpu.pipeline_mode<synchronous>, transform_indices = @transform_2, window_bounds = array<i64: 1, 128>}, {transform_indices = @transform_3, window_bounds = array<i64: 16, 128>}]} {
    %c0 = arith.constant 0 : index
    %c0_0 = arith.constant 0 : index
    %0 = vector.load %arg1[%c0, %c0_0] : memref<16x128xbf16, #tpu.memory_space<vmem>>, vector<16x128xbf16>
    %c0_1 = arith.constant 0 : index
    %c0_2 = arith.constant 0 : index
    %1 = vector.load %arg2[%c0_1, %c0_2] : memref<128x128xbf16, #tpu.memory_space<vmem>>, vector<128x128xbf16>
    %cst = arith.constant dense<0.000000e+00> : vector<16x128xf32>
    %2 = tpu.matmul %0, %1, %cst {dimension_numbers = #tpu.dot_dimension_numbers<[1], [0], [0], [1], [0, 0, 1, 1], [], []>} : vector<16x128xbf16>, vector<128x128xbf16>, vector<16x128xf32> -> vector<16x128xf32>
    %c0_3 = arith.constant 0 : index
    %c0_4 = arith.constant 0 : index
    %3 = vector.load %arg3[%c0_3, %c0_4] : memref<1x128xf32, #tpu.memory_space<vmem>>, vector<1x128xf32>
    %4 = vector.broadcast %3 : vector<1x128xf32> to vector<16x128xf32>
    %5 = arith.addf %2, %4 : vector<16x128xf32>
    %c0_5 = arith.constant 0 : index
    %c0_6 = arith.constant 0 : index
    %6 = vector.load %arg4[%c0_5, %c0_6] : memref<16x128xf32, #tpu.memory_space<vmem>>, vector<16x128xf32>
    tpu.vector_store %arg4[%c0_5, %c0_6], %5 {strides = array<i32>} : memref<16x128xf32, #tpu.memory_space<vmem>>, vector<16x128xf32>,
    return
  }
  func.func @transform_0(%arg0: i32) -> (i32, i32) {
    %c0_i32 = arith.constant 0 : i32
    %c0_i32_0 = arith.constant 0 : i32
    return %arg0, %c0_i32 : i32, i32
  }
  func.func @transform_1(%arg0: i32) -> (i32, i32) {
    %c0_i32 = arith.constant 0 : i32
    %c0_i32_0 = arith.constant 0 : i32
    %c0_i32_1 = arith.constant 0 : i32
    return %c0_i32, %c0_i32_0 : i32, i32
  }
  func.func @transform_2(%arg0: i32) -> (i32, i32) {
    %c0_i32 = arith.constant 0 : i32
    %c0_i32_0 = arith.constant 0 : i32
    %c0_i32_1 = arith.constant 0 : i32
    return %c0_i32, %c0_i32_0 : i32, i32
  }
  func.func @transform_3(%arg0: i32) -> (i32, i32) {
    %c0_i32 = arith.constant 0 : i32
    %c0_i32_0 = arith.constant 0 : i32
    return %arg0, %c0_i32 : i32, i32
  }
}

</mosaic_0001>

<bundles_post_ra>
// kernel: pose_linear.1
= control target key start
LH: loop header
LB: loop body
LE: loop exit
PB: predicated region body
PF: predicated region fallthrough
CT: control target
= control target key end

     0   :  { %8 = vsyncpa [#allocation3], 0  ;;  %s432_s0 = inlined_call_operand.hbm [shape: bf16[16,128], index: 0, kind: input, shape index: {}]   ;;  %s433_s1 = inlined_call_operand.hbm [shape: bf16[128,128], index: 1, kind: input, shape index: {}]   ;;  %s434_s2 = inlined_call_operand.hbm [shape: f32[1,128], index: 2, kind: input, shape index: {}]   ;;  %s435_s3 = inlined_call_operand.hbm [shape: f32[16,128], index: 3, kind: output, shape index: {}]  }
   0x1   :  { %9 = vsyncpa [#allocation6], 0 }
   0x2   :  { %10 = vsyncpa [#allocation4], 0  ;;  %s347_s12 = smov [#allocation5]   ;;  %s348_s14 = smov [#allocation2]  }
   0x3   :  { %s28_s13 = sshll.u32 %s347_s12, 4  ;;  %s16_s15 = sshll.u32 %s348_s14, 4  ;;  %s29_s13 = int_to_ptr.vmem [resolvable:$true] %s28_s13  ;;  %s377_s15 = int_to_ptr.vmem [resolvable:$true] %s16_s15 }
   0x4   :  { %s253_s18 = scalar_lea.hbm %s433_s1, 1024 }
   0x5   :  { %p254_p0 = scmp.ne.s32.totalorder %s433_s1, %s253_s18  ;;  %p257_p1 = scmp.lt.u32.totalorder %s253_s18, %s433_s1 }
   0x7   :  { %p259_p2 = pnand %p257_p1, %p254_p0 }
   0x9   :  { %262 = shalt.err (!%p259_p2)
}
   0xa   :  { %s263_s23 = scalar_lea.vmem %s29_s13, 1024  ;;  %p268_p4 = scmp.lt.s32.totalorder %s29_s13, %s29_s13 }
   0xb   :  { %p264_p3 = scmp.ne.s32.totalorder %s29_s13, %s263_s23  ;;  %p269_p5 = scmp.lt.s32.totalorder %s263_s23, %s263_s23 }
   0xd   :  { %p270_p6 = por %p269_p5, %p268_p4 }
   0xf   :  { %p271_p7 = pnand %p270_p6, %p264_p3 }
  0x11   :  { %274 = shalt.err (!%p271_p7)
}
  0x12   :  { %s349_s24 = smov 64   ;;  %s350_s25 = smov 4  }
  0x13   :  { %34 = dma.hbm_to_vmem [thread:$0]  %s433_s1, 1024, %s29_s13, [#allocation6], %s349_s24, %s349_s24, %s350_s25  }
  0x14   :  { %s275_s30 = scalar_lea.hbm %s432_s0, 128 }
  0x15   :  { %p276_p8 = scmp.ne.s32.totalorder %s432_s0, %s275_s30  ;;  %p279_p9 = scmp.lt.u32.totalorder %s275_s30, %s432_s0 }
  0x17   :  { %p281_p10 = pnand %p279_p9, %p276_p8 }
  0x19   :  { %284 = shalt.err (!%p281_p10)
}
  0x1a   :  { %s285_s8 = scalar_lea.vmem %s377_s15, 128  ;;  %p290_p12 = scmp.lt.s32.totalorder %s377_s15, %s377_s15 }
  0x1b   :  { %p286_p11 = scmp.ne.s32.totalorder %s377_s15, %s285_s8  ;;  %p291_p13 = scmp.lt.s32.totalorder %s285_s8, %s285_s8 }
  0x1d   :  { %p292_p0 = por %p291_p13, %p290_p12 }
  0x1f   :  { %p293_p1 = pnand %p292_p0, %p286_p11 }
  0x21   :  { %296 = shalt.err (!%p293_p1)
}
  0x22   :  { %22 = dma.hbm_to_vmem [thread:$0]  %s432_s0, 128, %s377_s15, [#allocation3], %s349_s24, %s349_s24, %s350_s25  }
  0x23   :  { %s351_s10 = smov [#allocation7]   ;;  %s297_s14 = scalar_lea.hbm %s434_s2, 16 }
  0x24   :  { %s41_s11 = sshll.u32 %s351_s10, 4  ;;  %p298_p2 = scmp.ne.s32.totalorder %s434_s2, %s297_s14  ;;  %s42_s11 = int_to_ptr.vmem [resolvable:$true] %s41_s11 }
  0x25   :  { %p301_p3 = scmp.lt.u32.totalorder %s297_s14, %s434_s2 }
  0x27   :  { %p303_p4 = pnand %p301_p3, %p298_p2 }
  0x29   :  { %306 = shalt.err (!%p303_p4)
}
  0x2a   :  { %s307_s20 = scalar_lea.vmem %s42_s11, 16  ;;  %s311_s0 = scalar_lea.vmem %s42_s11, 32 }
  0x2b   :  { %p308_p5 = scmp.ne.s32.totalorder %s42_s11, %s307_s20  ;;  %p312_p6 = scmp.lt.s32.totalorder %s42_s11, %s42_s11 }
  0x2c   :  { %p313_p7 = scmp.lt.s32.totalorder %s311_s0, %s307_s20 }
  0x2e   :  { %p314_p8 = por %p313_p7, %p312_p6 }
  0x30   :  { %p315_p9 = pnand %p314_p8, %p308_p5 }
  0x32   :  { %318 = shalt.err (!%p315_p9)
}
  0x33   :  { %44 = dma.hbm_to_vmem [thread:$0]  %s434_s2, 16, %s42_s11, [#allocation6]  }
  0x34   :  { %341 = dma.done.wait [#allocation3], 128  }
  0x35   :  { %342 = vsyncadd [#allocation3], 4294967168 }
  0x36   :  { %343 = dma.done.wait [#allocation6], 1040  }
  0x37   :  { %344 = vsyncadd [#allocation6], 4294966256  ;;  %v352_v0 = vmov 0.0   ;;  %vm353_vm0 = vmmov 0   ;;  %v244_v1 = vld [vmem:[#allocation5] sm:$0xff]   ;;  %v245_v2 = vld [vmem:[#allocation5 + $0x8] sm:$0xff]  }
  0x38   :  { %214 = vmatprep.subr.bf16.mxu0 %v352_v0  ;;  %230 = vmatprep.mubr.msk.bf16.mxu0 %vm353_vm0, %v352_v0  ;;  %v246_v3 = vld [vmem:[#allocation5 + $0x10] sm:$0xff]   ;;  %v247_v4 = vld [vmem:[#allocation5 + $0x18] sm:$0xff]   ;;  %v248_v5 = vld [vmem:[#allocation5 + $0x20] sm:$0xff]   ;;  %s354_s2 = smov [#allocation8]  }
  0x39   :  { %215 = vmatpush3.bf16.msra.mxu0 %v244_v1  ;;  %v249_v6 = vld [vmem:[#allocation5 + $0x28] sm:$0xff]   ;;  %v250_v7 = vld [vmem:[#allocation5 + $0x30] sm:$0xff]   ;;  %v251_v8 = vld [vmem:[#allocation5 + $0x38] sm:$0xff]   ;;  %s182_s22 = sshll.u32 %s354_s2, 4  ;;  %s183_s22 = int_to_ptr.vmem [resolvable:$true] %s182_s22 }
  0x3a   :  { %216 = vmatprep.subr.bf16.mxu0 %v352_v0  ;;  %v252_v9 = vld [vmem:[#allocation2] sm:$0xff]   ;;  %v195_v10 = vld [vmem:[#allocation7] ss:$0 sm:$0xff]  ;;  %s319_s23 = scalar_lea.vmem %s183_s22, 256  ;;  %p324_p11 = scmp.lt.s32.totalorder %s183_s22, %s183_s22 }
  0x3b   :  { %p320_p10 = scmp.ne.s32.totalorder %s183_s22, %s319_s23  ;;  %p325_p12 = scmp.lt.s32.totalorder %s319_s23, %s319_s23 }
  0x3d   :  { %217 = vmatpush3.bf16.msra.mxu0 %v245_v2  ;;  %p326_p13 = por %p325_p12, %p324_p11 }
  0x3e   :  { %218 = vmatprep.subr.bf16.mxu0 %v352_v0 }
  0x3f   :  { %p327_p0 = pnand %p326_p13, %p320_p10 }
  0x41   :  { %219 = vmatpush3.bf16.msra.mxu0 %v246_v3 }
  0x42   :  { %220 = vmatprep.subr.bf16.mxu0 %v352_v0 }
  0x45   :  { %221 = vmatpush3.bf16.msra.mxu0 %v247_v4 }
  0x46   :  { %222 = vmatprep.subr.bf16.mxu0 %v352_v0 }
  0x49   :  { %223 = vmatpush3.bf16.msra.mxu0 %v248_v5 }
  0x4a   :  { %224 = vmatprep.subr.bf16.mxu0 %v352_v0 }
  0x4d   :  { %225 = vmatpush3.bf16.msra.mxu0 %v249_v6 }
  0x4e   :  { %226 = vmatprep.subr.bf16.mxu0 %v352_v0 }
  0x51   :  { %227 = vmatpush3.bf16.msra.mxu0 %v250_v7 }
  0x52   :  { %228 = vmatprep.subr.bf16.mxu0 %v352_v0 }
  0x55   :  { %229 = vmatpush3.bf16.msra.mxu0 %v251_v8 }
  0x58   :  { %231 = vmatmul.mubr.bf16.vlgmr.msra.gmra.mrb[0].mxu0 %v252_v9 }
 0x12b   :  { %v168_v11 = vpop.f32.mrb[0].mxu0 }
 0x12c   :  { %v169_v12 = vadd.f32 %v195_v10, %v168_v11  ;;  %v232_v13 = vpop.f32.mrb[1].mxu0 }
 0x12d   :  { %v171_v14 = vpop.f32.mrb[2].mxu0 }
 0x12e   :  { %175 = vst [vmem:[#allocation8] sm:$0xff] %v169_v12  ;;  %v172_v15 = vadd.f32 %v195_v10, %v171_v14  ;;  %v233_v16 = vpop.f32.mrb[3].mxu0 }
 0x130   :  { %176 = vst [vmem:[#allocation8 + $0x8] sm:$0xff] %v172_v15 }
 0x131   :  { %330 = shalt.err (!%p327_p0)
}
 0x132   :  { %s331_s26 = scalar_lea.hbm %s435_s3, 256 }
 0x133   :  { %p332_p1 = scmp.ne.s32.totalorder %s435_s3, %s331_s26  ;;  %p335_p2 = scmp.lt.u32.totalorder %s331_s26, %s435_s3 }
 0x135   :  { %p337_p3 = pnand %p335_p2, %p332_p1 }
 0x137   :  { %340 = shalt.err (!%p337_p3)
}
 0x138   :  { %s355_s4 = smov 128   ;;  %s356_s5 = smov 8  }
 0x139   :  { %188 = dma.vmem_to_hbm [thread:$0]  %s183_s22, 256, %s435_s3, [#allocation4], %s355_s4, %s355_s4, %s356_s5  }
 0x13a   :  { %345 = dma.done.wait [#allocation4], 256  }
 0x13b   :  { %346 = vsyncadd [#allocation4], 4294967040 }
 0x13c   :  { %192 = vsyncpa [#allocation3], 1 }
 0x13d   :  { %193 = vsyncpa [#allocation6], 1 }
 0x13e   :  { %194 = vsyncpa [#allocation4], 1 }

</bundles_post_ra>
